<compile_context>
chip_gen: v7x
topology: tpu7x:2x2x1
jax: 0.10.0
libtpu: 0.0.40
codegen_flags: <defaults>
</compile_context>

<pallas_src>
import functools

import jax
import jax.numpy as jnp
from jax.experimental import pallas as pl
from jax.experimental.pallas import tpu as pltpu

N_DIMS = 2
N_TRAFO_PARAMS = 4  # rotation(1) + translation(2) + scale(1) for n_dims == 2


def _round_up(x, m):
    return ((x + m - 1) // m) * m


def _homogeneous_shape_kernel(params_ref, mean_ref, comp_ref, out_ref):
    # params_ref: (TB, E+4)
    # mean_ref  : (1, 2*Pp)   fused lanes: [0:Pp] = x plane, [Pp:2Pp] = y plane
    # comp_ref  : (E, 2*Pp)   same fused lane layout
    # out_ref   : (2, TB, Pp) coordinate-major output planes
    E = comp_ref.shape[0]
    Pp = out_ref.shape[2]

    # parameter split (the original module's index_select is static slicing)
    sp = params_ref[:, :E]                       # (TB, E)
    rot = params_ref[:, E:E + 1]                 # (TB, 1)
    tx = params_ref[:, E + 1:E + 2]              # (TB, 1)
    ty = params_ref[:, E + 2:E + 3]              # (TB, 1)
    scale = params_ref[:, E + 3:E + 4]           # (TB, 1)

    # ShapeLayer: mean + sum_e param_e * component_e.
    # Both coordinate planes in ONE lane-dense MXU matmul (K = E is tiny, so the
    # matmul cost is push/drain overhead — pay it once, not twice).
    r = jnp.dot(sp, comp_ref[...], preferred_element_type=jnp.float32) + mean_ref[...]
    x = r[:, :Pp]                                # lane-aligned static slices
    y = r[:, Pp:]

    # HomogeneousTransformationLayer: fold scale into the rotation on the (TB,1)
    # columns and let the elementwise ops carry the column operand (lane splat);
    # no full-width broadcast materialization.
    sc_c = scale * jnp.cos(rot)                  # (TB, 1)
    sc_s = scale * jnp.sin(rot)                  # (TB, 1)

    out_ref[0] = sc_c * x - sc_s * y + tx
    out_ref[1] = sc_s * x + sc_c * y + ty


def prepare_shape_model(mean, components):
    """One-time preprocessing of the (constant) ASM model tensors.

    mean: (P, 2), components: (E, P, 2)  ->
      mean_fused: (1, 2*Pp), comp_fused: (E, 2*Pp), Pp = round_up(P, 128),
      lanes [0:Pp] hold the x plane and [Pp:2Pp] the y plane.
    """
    E, P, D = components.shape
    assert D == N_DIMS
    Pp = _round_up(max(P, 1), 128)

    comp = jnp.transpose(components.astype(jnp.float32), (2, 0, 1))      # (2, E, P)
    comp = jnp.pad(comp, ((0, 0), (0, 0), (0, Pp - P)))                  # (2, E, Pp)
    comp_fused = jnp.concatenate([comp[0], comp[1]], axis=-1)            # (E, 2*Pp)

    mean_t = jnp.transpose(mean.astype(jnp.float32), (1, 0))             # (2, P)
    mean_t = jnp.pad(mean_t, ((0, 0), (0, Pp - P)))                      # (2, Pp)
    mean_fused = jnp.concatenate([mean_t[0], mean_t[1]], axis=-1)[None]  # (1, 2*Pp)
    return mean_fused, comp_fused, P


def _vmem_budget():
    """(tile budget bytes, vmem_limit_bytes), generation-aware with safe fallback."""
    cap = 64 << 20  # conservative default (v7x per-TC VMEM)
    try:
        cap = int(getattr(pltpu.get_tpu_info(), "vmem_capacity_bytes", cap))
    except Exception:
        pass
    return (2 * cap) // 5, cap // 2


def _pick_batch_tile(B, E, Pp, budget_bytes):
    """Largest batch tile (multiple of 8) such that the resident model plus the
    streamed params/out tiles fit the VMEM tile budget; guarantees >= 2 grid
    steps for B >= 16 so both v7x TensorCores get work."""
    bytes_f32 = 4
    # comp + mean, counted with the default double-buffering of BlockSpec inputs
    resident = 2 * bytes_f32 * (E * 2 * Pp + 2 * Pp)
    # per batch row: double-buffered params + out tiles, plus the matmul result
    per_row = bytes_f32 * (2 * (E + N_TRAFO_PARAMS) + 2 * (2 * Pp) + 2 * Pp)

    avail = budget_bytes - resident
    if avail < 8 * per_row:
        raise ValueError(
            f"ASM model (E={E}, Pp={Pp}) does not fit the VMEM tile budget "
            f"({budget_bytes} bytes); stream the components over a second grid "
            f"axis instead.")

    tb = min(int(avail // per_row), 4096)
    if B >= 16:
        # force >= 2 (roughly balanced) grid steps for megacore sharding
        tb = min(tb, _round_up(pl.cdiv(B, 2), 8))
    tb = max(8, (tb // 8) * 8)
    if tb >= B:
        return int(B)   # whole batch in one step; a full-dim block is always legal
    return int(tb)


@functools.partial(jax.jit, static_argnames=("n_points", "return_coord_major"))
def homogeneous_shape_layer_prepared(params, mean_fused, comp_fused, *,
                                     n_points, return_coord_major=True):
    """Fast path on prepared model tensors.

    params: (B, E+4); mean_fused: (1, 2*Pp); comp_fused: (E, 2*Pp).
    Default returns coordinate-major padded planes (2, B, Pp) — the valid
    landmarks are [:, :, :n_points] — avoiding an extra slice+transpose HBM pass.
    With return_coord_major=False, returns the module's (B, P, 2) convention.
    """
    B, n_params = params.shape
    E, L = comp_fused.shape
    Pp = L // 2
    assert n_params == E + N_TRAFO_PARAMS

    budget, vmem_limit = _vmem_budget()
    TB = _pick_batch_tile(B, E, Pp, budget)
    nb = pl.cdiv(B, TB)

    out = pl.pallas_call(
        _homogeneous_shape_kernel,
        out_shape=jax.ShapeDtypeStruct((N_DIMS, B, Pp), jnp.float32),
        grid_spec=pltpu.PrefetchScalarGridSpec(
            num_scalar_prefetch=0,
            grid=(nb,),
            in_specs=[
                # streamed per batch tile
                pl.BlockSpec((TB, n_params), lambda i: (i, 0)),
                # resident model constants (same block every step)
                pl.BlockSpec((1, L), lambda i: (0, 0)),
                pl.BlockSpec((E, L), lambda i: (0, 0)),
            ],
            out_specs=pl.BlockSpec((N_DIMS, TB, Pp), lambda i: (0, i, 0)),
        ),
        compiler_params=pltpu.CompilerParams(
            dimension_semantics=("parallel",),
            vmem_limit_bytes=vmem_limit,
        ),
    )(params, mean_fused, comp_fused)

    if return_coord_major:
        return out                                   # (2, B, Pp) padded planes
    # Match the PyTorch module's (B, P, 2) convention (costs one extra HBM pass).
    return jnp.transpose(out[:, :, :n_points], (1, 2, 0))


def homogeneous_shape_layer(params, mean, components):
    """Module-compatible wrapper: params (B, E+4), mean (P, 2),
    components (E, P, 2) -> (B, P, 2)."""
    mean_fused, comp_fused, P = prepare_shape_model(mean, components)
    return homogeneous_shape_layer_prepared(params, mean_fused, comp_fused,
                                            n_points=P, return_coord_major=False)


def _reference(params, mean, components):
    """Pure-JAX reference mirroring the PyTorch forward."""
    E = components.shape[0]
    sp = params[:, :E]
    rot = params[:, E][:, None]
    tx = params[:, E + 1][:, None]
    ty = params[:, E + 2][:, None]
    sc = params[:, E + 3][:, None]
    shapes = mean[None] + jnp.einsum("be,epd->bpd", sp, components)
    x, y = shapes[..., 0], shapes[..., 1]
    c, s = jnp.cos(rot), jnp.sin(rot)
    nx = sc * (c * x - s * y) + tx
    ny = sc * (s * x + c * y) + ty
    return jnp.stack([nx, ny], axis=-1)


if __name__ == "__main__":
    B, P, E = 2, 16, 8
    n_params = E + N_TRAFO_PARAMS

    key = jax.random.PRNGKey(0)
    k_params, k_mean, k_comp = jax.random.split(key, 3)

    params = jax.random.normal(k_params, (B, n_params), dtype=jnp.float32) * 0.5
    # keep scale away from zero for a meaningful transform
    params = params.at[:, E + 3].set(1.0 + 0.1 * params[:, E + 3])
    mean = jax.random.normal(k_mean, (P, N_DIMS), dtype=jnp.float32)
    components = jax.random.normal(k_comp, (E, P, N_DIMS), dtype=jnp.float32) * 0.1

    ref = _reference(params, mean, components)

    # Module-compatible path: (B, P, 2)
    out = homogeneous_shape_layer(params, mean, components)
    out = jax.block_until_ready(out)
    assert out.shape == (B, P, N_DIMS), out.shape
    assert jnp.allclose(out, ref, atol=1e-5, rtol=1e-5), (
        float(jnp.max(jnp.abs(out - ref))))

    # Default fast path: coordinate-major padded planes (2, B, Pp), no extra
    # slice+transpose HBM pass; valid landmarks are [:, :, :P].
    mean_fused, comp_fused, n_points = prepare_shape_model(mean, components)
    planes = homogeneous_shape_layer_prepared(params, mean_fused, comp_fused,
                                              n_points=n_points)
    planes = jax.block_until_ready(planes)
    ref_planes = jnp.transpose(ref, (2, 0, 1))       # (2, B, P)
    assert jnp.allclose(planes[:, :, :n_points], ref_planes, atol=1e-5, rtol=1e-5), (
        float(jnp.max(jnp.abs(planes[:, :, :n_points] - ref_planes))))

    print("KERNEL_OK")
</pallas_src>

<mosaic_0001>
module attributes {stable_mosaic.version = 11 : i64} {
  func.func @_homogeneous_shape_kernel(%arg0: i32, %arg1: memref<2x12xf32, #tpu.memory_space<vmem>>, %arg2: memref<1x256xf32, #tpu.memory_space<vmem>>, %arg3: memref<8x256xf32, #tpu.memory_space<vmem>>, %arg4: memref<2x2x128xf32, #tpu.memory_space<vmem>>) attributes {dimension_semantics = [#tpu.dimension_semantics<parallel>], iteration_bounds = array<i64: 1>, scalar_prefetch = 0 : i64, scratch_operands = 0 : i64, tpu.core_type = #tpu.core_type<tc>, window_params = [{transform_indices = @transform_0, window_bounds = array<i64: 2, 12>}, {pipeline_mode = #tpu.pipeline_mode<synchronous>, transform_indices = @transform_1, window_bounds = array<i64: 1, 256>}, {pipeline_mode = #tpu.pipeline_mode<synchronous>, transform_indices = @transform_2, window_bounds = array<i64: 8, 256>}, {transform_indices = @transform_3, window_bounds = array<i64: 2, 2, 128>}]} {
    %c0 = arith.constant 0 : index
    %c0_0 = arith.constant 0 : index
    %0 = vector.load %arg1[%c0, %c0_0] : memref<2x12xf32, #tpu.memory_space<vmem>>, vector<2x8xf32>
    %c0_1 = arith.constant 0 : index
    %c8 = arith.constant 8 : index
    %1 = vector.load %arg1[%c0_1, %c8] : memref<2x12xf32, #tpu.memory_space<vmem>>, vector<2x1xf32>
    %c0_2 = arith.constant 0 : index
    %c9 = arith.constant 9 : index
    %2 = vector.load %arg1[%c0_2, %c9] : memref<2x12xf32, #tpu.memory_space<vmem>>, vector<2x1xf32>
    %c0_3 = arith.constant 0 : index
    %c10 = arith.constant 10 : index
    %3 = vector.load %arg1[%c0_3, %c10] : memref<2x12xf32, #tpu.memory_space<vmem>>, vector<2x1xf32>
    %c0_4 = arith.constant 0 : index
    %c11 = arith.constant 11 : index
    %4 = vector.load %arg1[%c0_4, %c11] : memref<2x12xf32, #tpu.memory_space<vmem>>, vector<2x1xf32>
    %c0_5 = arith.constant 0 : index
    %c0_6 = arith.constant 0 : index
    %5 = vector.load %arg3[%c0_5, %c0_6] : memref<8x256xf32, #tpu.memory_space<vmem>>, vector<8x256xf32>
    %cst = arith.constant dense<0.000000e+00> : vector<2x256xf32>
    %6 = tpu.matmul %0, %5, %cst {dimension_numbers = #tpu.dot_dimension_numbers<[1], [0], [0], [1], [0, 0, 1, 1], [], []>} : vector<2x8xf32>, vector<8x256xf32>, vector<2x256xf32> -> vector<2x256xf32>
    %c0_7 = arith.constant 0 : index
    %c0_8 = arith.constant 0 : index
    %7 = vector.load %arg2[%c0_7, %c0_8] : memref<1x256xf32, #tpu.memory_space<vmem>>, vector<1x256xf32>
    %8 = vector.broadcast %7 : vector<1x256xf32> to vector<2x256xf32>
    %9 = arith.addf %6, %8 : vector<2x256xf32>
    %10 = vector.extract_strided_slice %9 {offsets = [0, 0], sizes = [2, 128], strides = [1, 1]} : vector<2x256xf32> to vector<2x128xf32>
    %11 = vector.extract_strided_slice %9 {offsets = [0, 128], sizes = [2, 128], strides = [1, 1]} : vector<2x256xf32> to vector<2x128xf32>
    %12 = math.cos %1 : vector<2x1xf32>
    %13 = arith.mulf %4, %12 : vector<2x1xf32>
    %14 = math.sin %1 : vector<2x1xf32>
    %15 = arith.mulf %4, %14 : vector<2x1xf32>
    %16 = vector.broadcast %13 : vector<2x1xf32> to vector<2x128xf32>
    %17 = arith.mulf %16, %10 : vector<2x128xf32>
    %18 = vector.broadcast %15 : vector<2x1xf32> to vector<2x128xf32>
    %19 = arith.mulf %18, %11 : vector<2x128xf32>
    %20 = arith.subf %17, %19 : vector<2x128xf32>
    %21 = vector.broadcast %2 : vector<2x1xf32> to vector<2x128xf32>
    %22 = arith.addf %20, %21 : vector<2x128xf32>
    %c0_9 = arith.constant 0 : index
    %c0_10 = arith.constant 0 : index
    %c0_11 = arith.constant 0 : index
    %23 = vector.load %arg4[%c0_9, %c0_10, %c0_11] : memref<2x2x128xf32, #tpu.memory_space<vmem>>, vector<1x2x128xf32>
    %24 = vector.shape_cast %23 : vector<1x2x128xf32> to vector<2x128xf32>
    %25 = vector.shape_cast %22 : vector<2x128xf32> to vector<1x2x128xf32>
    tpu.vector_store %arg4[%c0_9, %c0_10, %c0_11], %25 {strides = array<i32>} : memref<2x2x128xf32, #tpu.memory_space<vmem>>, vector<1x2x128xf32>,
    %26 = vector.broadcast %15 : vector<2x1xf32> to vector<2x128xf32>
    %27 = arith.mulf %26, %10 : vector<2x128xf32>
    %28 = vector.broadcast %13 : vector<2x1xf32> to vector<2x128xf32>
    %29 = arith.mulf %28, %11 : vector<2x128xf32>
    %30 = arith.addf %27, %29 : vector<2x128xf32>
    %31 = vector.broadcast %3 : vector<2x1xf32> to vector<2x128xf32>
    %32 = arith.addf %30, %31 : vector<2x128xf32>
    %c1 = arith.constant 1 : index
    %c0_12 = arith.constant 0 : index
    %c0_13 = arith.constant 0 : index
    %33 = vector.load %arg4[%c1, %c0_12, %c0_13] : memref<2x2x128xf32, #tpu.memory_space<vmem>>, vector<1x2x128xf32>
    %34 = vector.shape_cast %33 : vector<1x2x128xf32> to vector<2x128xf32>
    %35 = vector.shape_cast %32 : vector<2x128xf32> to vector<1x2x128xf32>
    tpu.vector_store %arg4[%c1, %c0_12, %c0_13], %35 {strides = array<i32>} : memref<2x2x128xf32, #tpu.memory_space<vmem>>, vector<1x2x128xf32>,
    return
  }
  func.func @transform_0(%arg0: i32) -> (i32, i32) {
    %c0_i32 = arith.constant 0 : i32
    %c0_i32_0 = arith.constant 0 : i32
    return %arg0, %c0_i32 : i32, i32
  }
  func.func @transform_1(%arg0: i32) -> (i32, i32) {
    %c0_i32 = arith.constant 0 : i32
    %c0_i32_0 = arith.constant 0 : i32
    %c0_i32_1 = arith.constant 0 : i32
    return %c0_i32, %c0_i32_0 : i32, i32
  }
  func.func @transform_2(%arg0: i32) -> (i32, i32) {
    %c0_i32 = arith.constant 0 : i32
    %c0_i32_0 = arith.constant 0 : i32
    %c0_i32_1 = arith.constant 0 : i32
    return %c0_i32, %c0_i32_0 : i32, i32
  }
  func.func @transform_3(%arg0: i32) -> (i32, i32, i32) {
    %c0_i32 = arith.constant 0 : i32
    %c0_i32_0 = arith.constant 0 : i32
    %c0_i32_1 = arith.constant 0 : i32
    return %c0_i32, %arg0, %c0_i32_0 : i32, i32, i32
  }
}

</mosaic_0001>

<bundles_post_ra>
// kernel: homogeneous_shape_layer_prepared.1
= control target key start
LH: loop header
LB: loop body
LE: loop exit
PB: predicated region body
PF: predicated region fallthrough
CT: control target
= control target key end

     0   :  { %8 = vsyncpa [#allocation3], 0  ;;  %s555_s0 = inlined_call_operand.hbm [shape: f32[2,12], index: 0, kind: input, shape index: {}]   ;;  %s556_s1 = inlined_call_operand.vmem [shape: f32[1,256], index: 1, kind: input, shape index: {}]   ;;  %s557_s2 = inlined_call_operand.hbm [shape: f32[8,256], index: 2, kind: input, shape index: {}]   ;;  %s558_s3 = inlined_call_operand.vmem [shape: f32[2,2,128], index: 3, kind: output, shape index: {}]  }
   0x1   :  { %9 = vsyncpa [#allocation5], 0  ;;  %s463_s12 = smov [#allocation2]   ;;  %s464_s14 = smov [#allocation4]  }
   0x2   :  { %s16_s13 = sshll.u32 %s463_s12, 4  ;;  %s28_s15 = sshll.u32 %s464_s14, 4  ;;  %s17_s13 = int_to_ptr.vmem [resolvable:$true] %s16_s13  ;;  %s29_s15 = int_to_ptr.vmem [resolvable:$true] %s28_s15 }
   0x3   :  { %s415_s18 = scalar_lea.hbm %s555_s0, 32 }
   0x4   :  { %p416_p0 = scmp.ne.s32.totalorder %s555_s0, %s415_s18  ;;  %p419_p1 = scmp.lt.u32.totalorder %s415_s18, %s555_s0 }
   0x6   :  { %p421_p2 = pnand %p419_p1, %p416_p0 }
   0x8   :  { %424 = shalt.err (!%p421_p2)
}
   0x9   :  { %s425_s23 = scalar_lea.vmem %s17_s13, 32  ;;  %p430_p4 = scmp.lt.s32.totalorder %s17_s13, %s17_s13 }
   0xa   :  { %p426_p3 = scmp.ne.s32.totalorder %s17_s13, %s425_s23  ;;  %p431_p5 = scmp.lt.s32.totalorder %s425_s23, %s425_s23 }
   0xc   :  { %p432_p6 = por %p431_p5, %p430_p4 }
   0xe   :  { %p433_p7 = pnand %p432_p6, %p426_p3 }
  0x10   :  { %436 = shalt.err (!%p433_p7)
}
  0x11   :  { %19 = dma.hbm_to_vmem [thread:$0]  %s555_s0, 32, %s17_s13, [#allocation3]  }
  0x12   :  { %s437_s28 = scalar_lea.hbm %s557_s2, 256 }
  0x13   :  { %p438_p8 = scmp.ne.s32.totalorder %s557_s2, %s437_s28  ;;  %p441_p9 = scmp.lt.u32.totalorder %s437_s28, %s557_s2 }
  0x15   :  { %p443_p10 = pnand %p441_p9, %p438_p8 }
  0x17   :  { %446 = shalt.err (!%p443_p10)
}
  0x18   :  { %s447_s6 = scalar_lea.vmem %s29_s15, 256  ;;  %p452_p12 = scmp.lt.s32.totalorder %s29_s15, %s29_s15 }
  0x19   :  { %p448_p11 = scmp.ne.s32.totalorder %s29_s15, %s447_s6  ;;  %p453_p13 = scmp.lt.s32.totalorder %s447_s6, %s447_s6 }
  0x1b   :  { %p454_p0 = por %p453_p13, %p452_p12 }
  0x1d   :  { %p455_p1 = pnand %p454_p0, %p448_p11 }
  0x1f   :  { %458 = shalt.err (!%p455_p1)
}
  0x20   :  { %31 = dma.hbm_to_vmem [thread:$0]  %s557_s2, 256, %s29_s15, [#allocation5]  }
  0x21   :  { %459 = dma.done.wait [#allocation3], 32  }
  0x22   :  { %460 = vsyncadd [#allocation3], 4294967264 }
  0x23   :  { %461 = dma.done.wait [#allocation5], 256  }
  0x24   :  { %462 = vsyncadd [#allocation5], 4294967040  ;;  %v465_v0 = vmov 0.0   ;;  %v520_v1 = vld [vmem:[#allocation2] sm:$0x3]  ;;  %v40_v2 = vld [vmem:[#allocation4 + $0x8] sm:$0xff] }
  0x25   :  { %121 = vmatprep.mubr.f32.mxu0 %v465_v0  ;;  %v39_v3 = vld [vmem:[#allocation4] sm:$0xff]  ;;  %vm53_vm0 = vcmask 64512   ;;  %v131_v4 = vand.u32 2139095040, %v520_v1  ;;  %57 = vmatprep.subr.mxu0 %v40_v2  ;;  %v128_v6 = vand.u32 2147483647, %v520_v1  ;;  %vm130_vm8 = vcmp.lt.s32.totalorder %v520_v1, 0 }
  0x26   :  { %58 = vmatpush1.msra.mxu0 %v39_v3  ;;  %v466_v15 = vmov 683565275   ;;  %v467_v17 = vmov 2475754826   ;;  %v468_v19 = vmov 2131351028  }
  0x27   :  { %v132_v5 = vshrl.u32 %v131_v4, 23  ;;  %380 = vmatmul.mubr.msk.f32.vlgmr.msra.gmra.mrb[0].mxu0 %vm53_vm0, %v520_v1  ;;  %v135_v9 = vand.u32 8388607, %v128_v6  ;;  %v469_v21 = vmov 2102212464   ;;  %vm220_vm0 = vweird.f32 %v520_v1  ;;  %s474_s2 = smov 3  }
  0x28   :  { %v470_v23 = vmov 920167782   ;;  %v471_v30 = vmov 1326507024   ;;  %vm129_vm9 = vcmp.le.f32.partialorder %v128_v6, 0.7853982 }
  0x29   :  { %v381_v7 = vadd.s32 4294967169, %v132_v5  ;;  %v136_v12 = vor.u32 8388608, %v135_v9  ;;  %v473_v6 = vmov 9  }
  0x2a   :  { %408 = vset.pattern.permute.xlu0 %v473_v6 }
  0x2b   :  { %v138_v8 = vadd.s32 1, %v381_v7  ;;  %v176_v32 = vshll.u32 %v136_v12, 8 }
  0x2d   :  { %vm139_vm1 = vcmp.gt.s32.totalorder %v138_v8, 0 }
  0x2e   :  { %v140_v10 = vsel %vm139_vm1, %v138_v8, 0 }
  0x2f   :  { %v142_v11 = vand.u32 31, %v140_v10  ;;  %v141_v13 = vshrl.u32 %v140_v10, 5 }
  0x31   :  { %v143_v14 = vsub.s32 32, %v142_v11  ;;  %v145_v16 = vshll.u32 %v466_v15, %v142_v11  ;;  %v148_v18 = vshll.u32 %v467_v17, %v142_v11  ;;  %v151_v20 = vshll.u32 %v468_v19, %v142_v11 }
  0x32   :  { %v154_v22 = vshll.u32 %v469_v21, %v142_v11  ;;  %v157_v24 = vshll.u32 %v470_v23, %v142_v11  ;;  %vm160_vm2 = vcmp.lt.s32.totalorder %v141_v13, 1  ;;  %vm163_vm3 = vcmp.lt.s32.totalorder %v141_v13, 4 }
  0x33   :  { %v144_v25 = vshrl.u32 %v466_v15, %v143_v14  ;;  %v146_v26 = vshrl.u32 %v467_v17, %v143_v14  ;;  %v149_v27 = vshrl.u32 %v468_v19, %v143_v14  ;;  %v152_v28 = vshrl.u32 %v469_v21, %v143_v14 }
  0x34   :  { %v155_v29 = vshrl.u32 %v470_v23, %v143_v14  ;;  %v158_v31 = vshrl.u32 %v471_v30, %v143_v14  ;;  %vm161_vm4 = vcmp.lt.s32.totalorder %v141_v13, 2  ;;  %vm162_vm5 = vcmp.lt.s32.totalorder %v141_v13, 3 }
  0x35   :  { %v147_v33 = vor.u32 %v146_v26, %v145_v16  ;;  %v150_v34 = vor.u32 %v149_v27, %v148_v18  ;;  %v153_v35 = vor.u32 %v152_v28, %v151_v20 }
  0x36   :  { %v156_v36 = vor.u32 %v155_v29, %v154_v22  ;;  %v159_v37 = vor.u32 %v158_v31, %v157_v24  ;;  %v472_v24 = vmov 11  }
  0x37   :  { %v164_v38 = vsel %vm160_vm2, %v144_v25, %v147_v33  ;;  %v165_v39 = vsel %vm163_vm3, %v153_v35, 2102212464  ;;  %v168_v40 = vsel %vm160_vm2, %v147_v33, %v150_v34  ;;  %v172_v41 = vsel %vm160_vm2, %v150_v34, %v153_v35  ;;  %407 = vset.pattern.permute.xlu1 %v472_v24 }
  0x38   :  { %v166_v42 = vsel %vm162_vm5, %v150_v34, %v165_v39  ;;  %v169_v43 = vsel %vm163_vm3, %v156_v36, 920167782  ;;  %v173_v44 = vsel %vm163_vm3, %v159_v37, 1326507024  ;;  %v475_v39 = vmov 10  }
  0x39   :  { %v170_v45 = vsel %vm162_vm5, %v153_v35, %v169_v43  ;;  %v174_v46 = vsel %vm162_vm5, %v156_v36, %v173_v44  ;;  %v167_v47 = vsel %vm161_vm4, %v164_v38, %v166_v42 }
  0x3a   :  { %v171_v48 = vsel %vm161_vm4, %v168_v40, %v170_v45  ;;  %v175_v49 = vsel %vm161_vm4, %v172_v41, %v174_v46  ;;  %v183_v54 = vmul.u32 %v176_v32, %v167_v47  ;;  %v43_v46 = vlaneseq }
  0x3b   :  { %v527_v50 = vmul.u32.u64.low %v176_v32, %v175_v49  ;;  %v528_v51 = vmul.u32.u64.high %v176_v32, %v175_v49, %v527_v50  ;;  %v530_v52 = vmul.u32.u64.low %v176_v32, %v171_v48  ;;  %v531_v53 = vmul.u32.u64.high %v176_v32, %v171_v48, %v530_v52 }
  0x3c   :  { %v44_v47 = vshrl.u32 %v43_v46, 7  ;;  %v41_v50 = vld [vmem:[%s556_s1] sm:$0x3] }
  0x3d   :  { %vm185_vm6 = vc.u32 %v528_v51, %v530_v52  ;;  %v186_v55 = vadd.s32 1, %v531_v53  ;;  %v184_v3 = vadd.s32 %v530_v52, %v528_v51 }
  0x3e   :  { %v45_v48 = vsub.s32 0, %v44_v47  ;;  %v49_v49 = vsub.s32 1, %v44_v47 }
  0x3f   :  { %v187_v56 = vsel %vm185_vm6, %v186_v55, %v531_v53 }
  0x40   :  { %v188_v57 = vadd.s32 %v187_v56, %v183_v54  ;;  %v46_v51 = vrot.slane %v41_v50, %v45_v48  ;;  %v50_v52 = vrot.slane %v41_v50, %v49_v49 }
  0x42   :  { %v189_v58 = vadd.s32 536870912, %v188_v57 }
  0x44   :  { %v190_v59 = vshrl.u32 %v189_v58, 30 }
  0x46   :  { %v191_v60 = vshll.u32 %v190_v59, 30  ;;  %v214_v17 = vsub.s32 4, %v190_v59 }
  0x48   :  { %v192_v61 = vsub.s32 %v188_v57, %v191_v60  ;;  %v215_v20 = vsel %vm130_vm8, %v214_v17, %v190_v59 }
  0x49   :  { %v217_v22 = vsel %vm129_vm9, 0, %v215_v20 }
  0x4a   :  { %v194_v62 = vsub.s32 0, %v192_v61  ;;  %v329_v23 = vadd.s32 3, %v217_v22  ;;  %v221_v25 = vand.u32 3, %v217_v22 }
  0x4c   :  { %v382_v63 = vmin.u32 %v194_v62, %v192_v61  ;;  %v330_v26 = vand.u32 3, %v329_v23  ;;  %vm226_vm10 = vcmp.eq.s32.totalorder %v221_v25, 2  ;;  %vm223_vm12 = vcmp.eq.s32.totalorder %v221_v25, 0 }
  0x4d   :  { %vm222_vm14 = vcmp.lt.s32.totalorder %v221_v25, 2 }
  0x4e   :  { %v196_v0 = vclz %v382_v63  ;;  %vm335_vm11 = vcmp.eq.s32.totalorder %v330_v26, 2  ;;  %vm332_vm13 = vcmp.eq.s32.totalorder %v330_v26, 0  ;;  %vm331_vm15 = vcmp.lt.s32.totalorder %v330_v26, 2 }
  0x50   :  { %v383_v2 = vadd.s32 4294967294, %v196_v0 }
  0x52   :  { %vm384_vm7 = vcmp.lt.s32.totalorder %v383_v2, 0 }
  0x53   :  { %v199_v4 = vsel %vm384_vm7, 0, %v383_v2 }
  0x54   :  { %v200_v5 = vsub.s32 32, %v199_v4  ;;  %v201_v7 = vshll.u32 %v192_v61, %v199_v4  ;;  %v204_v8 = vsub.s32 4294967266, %v199_v4 }
  0x56   :  { %v202_v9 = vshrl.u32 %v184_v3, %v200_v5  ;;  %v205_v10 = vadd.s32 127, %v204_v8 }
  0x58   :  { %v203_v11 = vor.u32 %v202_v9, %v201_v7  ;;  %v206_v12 = vshll.u32 %v205_v10, 23 }
  0x5a   :  { %v207_v13 = vor.u32 4788187, %v206_v12  ;;  %v210_v14 = vcvt.s32.f32 %v203_v11 }
  0x5c   :  { %v208_v15 = vand.u32 2147483647, %v207_v13 }
  0x5e   :  { %v211_v16 = vmul.f32 %v210_v14, %v208_v15 }
  0x60   :  { %v212_v18 = vxor.u32 2147483648, %v211_v16 }
  0x62   :  { %v213_v19 = vsel %vm130_vm8, %v212_v18, %v211_v16 }
  0x63   :  { %v216_v21 = vsel %vm129_vm9, %v520_v1, %v213_v19 }
  0x64   :  { %411 = vcosq.f32 %v216_v21 }
  0x65   :  { %413 = vsinq.f32 %v216_v21 }
  0x6e   :  { %v412_v27 = vpop.eup %411 }
  0x6f   :  { %v414_v28 = vpop.eup %413  ;;  %v227_v29 = vxor.u32 2147483648, %v412_v27 }
  0x70   :  { %v224_v30 = vxor.u32 2147483648, %v414_v28 }
  0x71   :  { %v228_v31 = vsel %vm226_vm10, %v227_v29, %v414_v28  ;;  %v337_v32 = vsel %vm335_vm11, %v227_v29, %v414_v28 }
  0x72   :  { %v225_v33 = vsel %vm223_vm12, %v412_v27, %v224_v30  ;;  %v334_v34 = vsel %vm332_vm13, %v412_v27, %v224_v30 }
  0x73   :  { %v229_v35 = vsel %vm222_vm14, %v225_v33, %v228_v31  ;;  %v338_v36 = vsel %vm331_vm15, %v334_v34, %v337_v32 }
  0x74   :  { %v230_v37 = vsel %vm220_vm0, nan, %v229_v35  ;;  %v339_v38 = vsel %vm220_vm0, nan, %v338_v36 }
  0x75   :  { %232 = vrot.lane.b32.xlu0 %v230_v37, %s474_s2 }
  0x79   :  { %341 = vrot.lane.b32.xlu0 %v339_v38, %s474_s2 }
  0x7d   :  { %359 = vperm.xlu0 %408, %v520_v1  }
  0x81   :  { %410 = vset.pattern.permute.xlu0 %v475_v39 }
  0xe7   :  { %v233_v40 = vpop.permute.xlu0 %232 }
  0xe8   :  { %v235_v41 = vmul.f32 %v233_v40, %v520_v1 }
  0xea   :  { %347 = vperm.xlu1 %407, %v235_v41  }
  0xeb   :  { %v342_v42 = vpop.permute.xlu0 %341 }
  0xec   :  { %v344_v43 = vmul.f32 %v342_v42, %v520_v1 }
  0xee   :  { %353 = vperm.xlu1 %407, %v344_v43  }
  0xf2   :  { %409 = vset.pattern.permute.xlu1 %v475_v39 }
  0xf3   :  { %368 = vperm.xlu1 %409, %v520_v1  }
  0xfa   :  { %v123_v44 = vpop.f32.mrb[0].mxu0 }
  0xfb   :  { %v125_v45 = vpop.f32.mrb[1].mxu0  ;;  %v124_v54 = vadd.f32 %v123_v44, %v46_v51 }
  0xfc   :  { %v126_v55 = vadd.f32 %v125_v45, %v50_v52  ;;  %v360_v60 = vpop.permute.xlu0 %359 }
 0x169   :  { %v348_v53 = vpop.permute.xlu1 %347 }
 0x16a   :  { %v350_v57 = vmul.f32 %v348_v53, %v124_v54  ;;  %v365_v58 = vmul.f32 %v348_v53, %v126_v55 }
 0x16d   :  { %v354_v56 = vpop.permute.xlu1 %353 }
 0x16e   :  { %v356_v59 = vmul.f32 %v354_v56, %v126_v55  ;;  %v364_v1 = vmul.f32 %v354_v56, %v124_v54 }
 0x170   :  { %v357_v61 = vsub.f32 %v350_v57, %v356_v59  ;;  %v366_v62 = vadd.f32 %v365_v58, %v364_v1 }
 0x172   :  { %v362_v63 = vadd.f32 %v360_v60, %v357_v61  ;;  %v369_v0 = vpop.permute.xlu1 %368 }
 0x173   :  { %v371_v2 = vadd.f32 %v369_v0, %v366_v62 }
 0x174   :  { %363 = vst [vmem:[%s558_s3] sm:$0x3] %v362_v63 }
 0x175   :  { %389 = vst [vmem:[%s558_s3 + $0x2] sm:$0x3] %v371_v2 }
 0x176   :  { %378 = vsyncpa [#allocation3], 1 }
 0x177   :  { %379 = vsyncpa [#allocation5], 1 }

</bundles_post_ra>
